<compile_context>
chip_gen: v5e
topology: v5e:2x2
jax: 0.10.0
libtpu: 0.0.40
codegen_flags: <defaults>
</compile_context>

<pallas_src>
import functools

import numpy as np
import jax
import jax.numpy as jnp
from jax import lax
from jax.experimental import pallas as pl
from jax.experimental.pallas import tpu as pltpu


# ---------------------------------------------------------------------------
# Fused kernel: one grid step per batch element.
# ---------------------------------------------------------------------------

def _mha_kernel(x_ref, wqkv_ref, bqkv_ref, wo_ref, bo_ref, mask_ref, o_ref,
                *, n_heads, d_head):
    # x_ref: (S, D); wqkv: (D, 3D); bqkv: (1, 3D); wo: (D, D); bo: (1, D);
    # mask: (S, S) f32 (1.0 = masked); o_ref: (S, D)
    S, D = x_ref.shape
    scale = jnp.float32(1.0 / np.sqrt(d_head))

    x = x_ref[...]
    # Fused Q/K/V projection: one (S, D) x (D, 3D) MXU matmul.
    qkv = jnp.dot(x, wqkv_ref[...], preferred_element_type=jnp.float32) \
        + bqkv_ref[...]
    q = qkv[:, 0 * D:1 * D] * scale      # fold 1/sqrt(dh) into q (S*D elems)
    k = qkv[:, 1 * D:2 * D]
    v = qkv[:, 2 * D:3 * D]

    masked = mask_ref[...] > jnp.float32(0.0)   # hoisted; shared by all heads

    head_outs = []
    for h in range(n_heads):             # static unroll, all in one grid step
        lo = h * d_head
        qh = q[:, lo:lo + d_head]
        kh = k[:, lo:lo + d_head]
        vh = v[:, lo:lo + d_head]
        # scores = q_h @ k_h^T  (contract last dims, no explicit transpose)
        s = lax.dot_general(qh, kh,
                            dimension_numbers=(((1,), (1,)), ((), ())),
                            preferred_element_type=jnp.float32)
        # exact masked_fill(mask == 1, -1e6) semantics
        s = jnp.where(masked, jnp.float32(-1000000.0), s)
        m = jnp.max(s, axis=-1, keepdims=True)
        e = jnp.exp(s - m)
        # reciprocal goes to the EUP slot instead of a VPU divide
        a = e * pl.reciprocal(jnp.sum(e, axis=-1, keepdims=True))
        head_outs.append(jnp.dot(a, vh, preferred_element_type=jnp.float32))

    conc = jnp.concatenate(head_outs, axis=-1)          # (S, D), lane-dense
    o_ref[...] = jnp.dot(conc, wo_ref[...],
                         preferred_element_type=jnp.float32) + bo_ref[...]


# ---------------------------------------------------------------------------
# Wrapper
# ---------------------------------------------------------------------------

@functools.partial(jax.jit, static_argnames=("n_heads",))
def multi_head_attention(x, params, n_heads, mask=None):
    """Forward pass matching MultiHeadAttention.forward (eval mode).

    x: (S, B, D) float32.  mask: optional (S, S) int/bool; entries == 1 are
    filled with -1e6 in the attention scores.
    """
    S, B, D = x.shape
    dh = D // n_heads

    # Fuse the three projection weights into one (D, 3D) matmul operand.
    wqkv = jnp.concatenate([params["wq"], params["wk"], params["wv"]], axis=1)
    bqkv = jnp.concatenate([params["bq"], params["bk"], params["bv"]], axis=1)

    if mask is None:
        mask_f32 = jnp.zeros((S, S), jnp.float32)
    else:
        mask_f32 = (jnp.broadcast_to(mask, (S, S)) == 1).astype(jnp.float32)

    xb = jnp.transpose(x, (1, 0, 2))     # (B, S, D): batch-major for the grid

    kernel = functools.partial(_mha_kernel, n_heads=n_heads, d_head=dh)
    out_b = pl.pallas_call(
        kernel,
        out_shape=jax.ShapeDtypeStruct((B, S, D), jnp.float32),
        grid=(B,),
        in_specs=[
            pl.BlockSpec((None, S, D), lambda b: (b, 0, 0)),   # x (per batch)
            pl.BlockSpec((D, 3 * D), lambda b: (0, 0)),        # wqkv (resident)
            pl.BlockSpec((1, 3 * D), lambda b: (0, 0)),        # bqkv
            pl.BlockSpec((D, D), lambda b: (0, 0)),            # wo
            pl.BlockSpec((1, D), lambda b: (0, 0)),            # bo
            pl.BlockSpec((S, S), lambda b: (0, 0)),            # mask
        ],
        out_specs=pl.BlockSpec((None, S, D), lambda b: (b, 0, 0)),
        compiler_params=pltpu.CompilerParams(
            dimension_semantics=("parallel",)),
    )(xb, wqkv, bqkv, params["wo"], params["bo"], mask_f32)

    # back to (S, B, D); dropout_layer in eval mode == identity
    return jnp.transpose(out_b, (1, 0, 2))


# ---------------------------------------------------------------------------
# Pure-JAX reference (mirrors the PyTorch forward exactly, eval mode)
# ---------------------------------------------------------------------------

def reference(x, params, n_heads, mask=None):
    S, B, D = x.shape
    H = n_heads
    dh = D // H
    x2 = x.reshape(S * B, D)
    q = x2 @ params["wq"] + params["bq"][0]
    k = x2 @ params["wk"] + params["bk"][0]
    v = x2 @ params["wv"] + params["bv"][0]
    q4 = q.reshape(S, B, H, dh).transpose(2, 1, 0, 3)
    k4 = k.reshape(S, B, H, dh).transpose(2, 1, 0, 3)
    v4 = v.reshape(S, B, H, dh).transpose(2, 1, 0, 3)
    scores = jnp.einsum("hbsd,hbtd->hbst", q4, k4) / np.sqrt(dh)
    if mask is not None:
        scores = jnp.where(mask == 1, -1000000.0, scores)
    a = jax.nn.softmax(scores, axis=-1)
    vh = jnp.einsum("hbst,hbtd->hbsd", a, v4)
    conc = vh.transpose(2, 1, 0, 3).reshape(S * B, D)
    out = conc @ params["wo"] + params["bo"][0]
    return out.reshape(S, B, D)


# ---------------------------------------------------------------------------
# Main
# ---------------------------------------------------------------------------

if __name__ == "__main__":
    S, B, D, H = 8, 2, 32, 4   # seq_len, batch, d_model, n_heads

    key = jax.random.PRNGKey(0)
    ks = jax.random.split(key, 9)

    def _w(k):
        return jax.random.normal(k, (D, D), jnp.float32) * 0.1

    def _b(k):
        return jax.random.normal(k, (1, D), jnp.float32) * 0.1

    params = {
        "wq": _w(ks[0]), "bq": _b(ks[1]),
        "wk": _w(ks[2]), "bk": _b(ks[3]),
        "wv": _w(ks[4]), "bv": _b(ks[5]),
        "wo": _w(ks[6]), "bo": _b(ks[7]),
    }
    x = jax.random.normal(ks[8], (S, B, D), jnp.float32)

    # --- no mask ---
    out = jax.block_until_ready(multi_head_attention(x, params, n_heads=H))
    ref = jax.block_until_ready(reference(x, params, n_heads=H))
    np.testing.assert_allclose(np.asarray(out), np.asarray(ref),
                               rtol=1e-4, atol=1e-5)

    # --- causal mask (hide future entries) ---
    causal = jnp.triu(jnp.ones((S, S), jnp.int32), k=1)
    out_m = jax.block_until_ready(
        multi_head_attention(x, params, n_heads=H, mask=causal))
    ref_m = jax.block_until_ready(
        reference(x, params, n_heads=H, mask=causal))
    np.testing.assert_allclose(np.asarray(out_m), np.asarray(ref_m),
                               rtol=1e-4, atol=1e-5)

    print("KERNEL_OK")
</pallas_src>

<mosaic_0001>
module attributes {stable_mosaic.version = 11 : i64} {
  func.func @_mha_kernel(%arg0: i32, %arg1: memref<1x8x32xf32, #tpu.memory_space<vmem>>, %arg2: memref<32x96xf32, #tpu.memory_space<vmem>>, %arg3: memref<1x96xf32, #tpu.memory_space<vmem>>, %arg4: memref<32x32xf32, #tpu.memory_space<vmem>>, %arg5: memref<1x32xf32, #tpu.memory_space<vmem>>, %arg6: memref<8x8xf32, #tpu.memory_space<vmem>>, %arg7: memref<1x8x32xf32, #tpu.memory_space<vmem>>) attributes {dimension_semantics = [#tpu.dimension_semantics<parallel>], iteration_bounds = array<i64: 2>, scalar_prefetch = 0 : i64, scratch_operands = 0 : i64, tpu.core_type = #tpu.core_type<tc>, window_params = [{transform_indices = @transform_0, window_bounds = array<i64: 1, 8, 32>}, {pipeline_mode = #tpu.pipeline_mode<synchronous>, transform_indices = @transform_1, window_bounds = array<i64: 32, 96>}, {pipeline_mode = #tpu.pipeline_mode<synchronous>, transform_indices = @transform_2, window_bounds = array<i64: 1, 96>}, {pipeline_mode = #tpu.pipeline_mode<synchronous>, transform_indices = @transform_3, window_bounds = array<i64: 32, 32>}, {pipeline_mode = #tpu.pipeline_mode<synchronous>, transform_indices = @transform_4, window_bounds = array<i64: 1, 32>}, {pipeline_mode = #tpu.pipeline_mode<synchronous>, transform_indices = @transform_5, window_bounds = array<i64: 8, 8>}, {transform_indices = @transform_6, window_bounds = array<i64: 1, 8, 32>}]} {
    %c0 = arith.constant 0 : index
    %c0_0 = arith.constant 0 : index
    %c0_1 = arith.constant 0 : index
    %0 = vector.load %arg1[%c0, %c0_0, %c0_1] : memref<1x8x32xf32, #tpu.memory_space<vmem>>, vector<1x8x32xf32>
    %1 = vector.shape_cast %0 : vector<1x8x32xf32> to vector<8x32xf32>
    %c0_2 = arith.constant 0 : index
    %c0_3 = arith.constant 0 : index
    %2 = vector.load %arg2[%c0_2, %c0_3] : memref<32x96xf32, #tpu.memory_space<vmem>>, vector<32x96xf32>
    %cst = arith.constant dense<0.000000e+00> : vector<8x96xf32>
    %3 = tpu.matmul %1, %2, %cst {dimension_numbers = #tpu.dot_dimension_numbers<[1], [0], [0], [1], [0, 0, 1, 1], [], []>} : vector<8x32xf32>, vector<32x96xf32>, vector<8x96xf32> -> vector<8x96xf32>
    %c0_4 = arith.constant 0 : index
    %c0_5 = arith.constant 0 : index
    %4 = vector.load %arg3[%c0_4, %c0_5] : memref<1x96xf32, #tpu.memory_space<vmem>>, vector<1x96xf32>
    %5 = vector.broadcast %4 : vector<1x96xf32> to vector<8x96xf32>
    %6 = arith.addf %3, %5 : vector<8x96xf32>
    %7 = vector.extract_strided_slice %6 {offsets = [0, 0], sizes = [8, 32], strides = [1, 1]} : vector<8x96xf32> to vector<8x32xf32>
    %cst_6 = arith.constant 0.353553385 : f32
    %8 = vector.broadcast %cst_6 : f32 to vector<8x32xf32>
    %9 = arith.mulf %7, %8 : vector<8x32xf32>
    %10 = vector.extract_strided_slice %6 {offsets = [0, 32], sizes = [8, 32], strides = [1, 1]} : vector<8x96xf32> to vector<8x32xf32>
    %11 = vector.extract_strided_slice %6 {offsets = [0, 64], sizes = [8, 32], strides = [1, 1]} : vector<8x96xf32> to vector<8x32xf32>
    %c0_7 = arith.constant 0 : index
    %c0_8 = arith.constant 0 : index
    %12 = vector.load %arg6[%c0_7, %c0_8] : memref<8x8xf32, #tpu.memory_space<vmem>>, vector<8x8xf32>
    %cst_9 = arith.constant 0.000000e+00 : f32
    %13 = vector.broadcast %cst_9 : f32 to vector<8x8xf32>
    %14 = arith.cmpf ogt, %12, %13 : vector<8x8xf32>
    %15 = vector.extract_strided_slice %9 {offsets = [0, 0], sizes = [8, 8], strides = [1, 1]} : vector<8x32xf32> to vector<8x8xf32>
    %16 = vector.extract_strided_slice %10 {offsets = [0, 0], sizes = [8, 8], strides = [1, 1]} : vector<8x32xf32> to vector<8x8xf32>
    %17 = vector.extract_strided_slice %11 {offsets = [0, 0], sizes = [8, 8], strides = [1, 1]} : vector<8x32xf32> to vector<8x8xf32>
    %cst_10 = arith.constant dense<0.000000e+00> : vector<8x8xf32>
    %18 = tpu.matmul %15, %16, %cst_10 {dimension_numbers = #tpu.dot_dimension_numbers<[1], [1], [0], [0], [0, 0, 1, 0], [], []>} : vector<8x8xf32>, vector<8x8xf32>, vector<8x8xf32> -> vector<8x8xf32>
    %cst_11 = arith.constant -1.000000e+06 : f32
    %19 = vector.broadcast %cst_11 : f32 to vector<8x8xf32>
    %20 = arith.select %14, %19, %18 : vector<8x8xi1>, vector<8x8xf32>
    %cst_12 = arith.constant dense<0xFF800000> : vector<8xf32>
    %21 = vector.multi_reduction <maximumf>, %20, %cst_12 [1] : vector<8x8xf32> to vector<8xf32>
    %22 = vector.shape_cast %21 : vector<8xf32> to vector<8x1xf32>
    %23 = vector.broadcast %22 : vector<8x1xf32> to vector<8x8xf32>
    %24 = arith.subf %20, %23 : vector<8x8xf32>
    %25 = math.exp %24 : vector<8x8xf32>
    %cst_13 = arith.constant dense<0.000000e+00> : vector<8xf32>
    %26 = vector.multi_reduction <add>, %25, %cst_13 [1] : vector<8x8xf32> to vector<8xf32>
    %27 = vector.shape_cast %26 : vector<8xf32> to vector<8x1xf32>
    %28 = tpu.reciprocal %27 : vector<8x1xf32> -> vector<8x1xf32>
    %29 = vector.broadcast %28 : vector<8x1xf32> to vector<8x8xf32>
    %30 = arith.mulf %25, %29 : vector<8x8xf32>
    %cst_14 = arith.constant dense<0.000000e+00> : vector<8x8xf32>
    %31 = tpu.matmul %30, %17, %cst_14 {dimension_numbers = #tpu.dot_dimension_numbers<[1], [0], [0], [1], [0, 0, 1, 1], [], []>} : vector<8x8xf32>, vector<8x8xf32>, vector<8x8xf32> -> vector<8x8xf32>
    %32 = vector.extract_strided_slice %9 {offsets = [0, 8], sizes = [8, 8], strides = [1, 1]} : vector<8x32xf32> to vector<8x8xf32>
    %33 = vector.extract_strided_slice %10 {offsets = [0, 8], sizes = [8, 8], strides = [1, 1]} : vector<8x32xf32> to vector<8x8xf32>
    %34 = vector.extract_strided_slice %11 {offsets = [0, 8], sizes = [8, 8], strides = [1, 1]} : vector<8x32xf32> to vector<8x8xf32>
    %cst_15 = arith.constant dense<0.000000e+00> : vector<8x8xf32>
    %35 = tpu.matmul %32, %33, %cst_15 {dimension_numbers = #tpu.dot_dimension_numbers<[1], [1], [0], [0], [0, 0, 1, 0], [], []>} : vector<8x8xf32>, vector<8x8xf32>, vector<8x8xf32> -> vector<8x8xf32>
    %cst_16 = arith.constant -1.000000e+06 : f32
    %36 = vector.broadcast %cst_16 : f32 to vector<8x8xf32>
    %37 = arith.select %14, %36, %35 : vector<8x8xi1>, vector<8x8xf32>
    %cst_17 = arith.constant dense<0xFF800000> : vector<8xf32>
    %38 = vector.multi_reduction <maximumf>, %37, %cst_17 [1] : vector<8x8xf32> to vector<8xf32>
    %39 = vector.shape_cast %38 : vector<8xf32> to vector<8x1xf32>
    %40 = vector.broadcast %39 : vector<8x1xf32> to vector<8x8xf32>
    %41 = arith.subf %37, %40 : vector<8x8xf32>
    %42 = math.exp %41 : vector<8x8xf32>
    %cst_18 = arith.constant dense<0.000000e+00> : vector<8xf32>
    %43 = vector.multi_reduction <add>, %42, %cst_18 [1] : vector<8x8xf32> to vector<8xf32>
    %44 = vector.shape_cast %43 : vector<8xf32> to vector<8x1xf32>
    %45 = tpu.reciprocal %44 : vector<8x1xf32> -> vector<8x1xf32>
    %46 = vector.broadcast %45 : vector<8x1xf32> to vector<8x8xf32>
    %47 = arith.mulf %42, %46 : vector<8x8xf32>
    %cst_19 = arith.constant dense<0.000000e+00> : vector<8x8xf32>
    %48 = tpu.matmul %47, %34, %cst_19 {dimension_numbers = #tpu.dot_dimension_numbers<[1], [0], [0], [1], [0, 0, 1, 1], [], []>} : vector<8x8xf32>, vector<8x8xf32>, vector<8x8xf32> -> vector<8x8xf32>
    %49 = vector.extract_strided_slice %9 {offsets = [0, 16], sizes = [8, 8], strides = [1, 1]} : vector<8x32xf32> to vector<8x8xf32>
    %50 = vector.extract_strided_slice %10 {offsets = [0, 16], sizes = [8, 8], strides = [1, 1]} : vector<8x32xf32> to vector<8x8xf32>
    %51 = vector.extract_strided_slice %11 {offsets = [0, 16], sizes = [8, 8], strides = [1, 1]} : vector<8x32xf32> to vector<8x8xf32>
    %cst_20 = arith.constant dense<0.000000e+00> : vector<8x8xf32>
    %52 = tpu.matmul %49, %50, %cst_20 {dimension_numbers = #tpu.dot_dimension_numbers<[1], [1], [0], [0], [0, 0, 1, 0], [], []>} : vector<8x8xf32>, vector<8x8xf32>, vector<8x8xf32> -> vector<8x8xf32>
    %cst_21 = arith.constant -1.000000e+06 : f32
    %53 = vector.broadcast %cst_21 : f32 to vector<8x8xf32>
    %54 = arith.select %14, %53, %52 : vector<8x8xi1>, vector<8x8xf32>
    %cst_22 = arith.constant dense<0xFF800000> : vector<8xf32>
    %55 = vector.multi_reduction <maximumf>, %54, %cst_22 [1] : vector<8x8xf32> to vector<8xf32>
    %56 = vector.shape_cast %55 : vector<8xf32> to vector<8x1xf32>
    %57 = vector.broadcast %56 : vector<8x1xf32> to vector<8x8xf32>
    %58 = arith.subf %54, %57 : vector<8x8xf32>
    %59 = math.exp %58 : vector<8x8xf32>
    %cst_23 = arith.constant dense<0.000000e+00> : vector<8xf32>
    %60 = vector.multi_reduction <add>, %59, %cst_23 [1] : vector<8x8xf32> to vector<8xf32>
    %61 = vector.shape_cast %60 : vector<8xf32> to vector<8x1xf32>
    %62 = tpu.reciprocal %61 : vector<8x1xf32> -> vector<8x1xf32>
    %63 = vector.broadcast %62 : vector<8x1xf32> to vector<8x8xf32>
    %64 = arith.mulf %59, %63 : vector<8x8xf32>
    %cst_24 = arith.constant dense<0.000000e+00> : vector<8x8xf32>
    %65 = tpu.matmul %64, %51, %cst_24 {dimension_numbers = #tpu.dot_dimension_numbers<[1], [0], [0], [1], [0, 0, 1, 1], [], []>} : vector<8x8xf32>, vector<8x8xf32>, vector<8x8xf32> -> vector<8x8xf32>
    %66 = vector.extract_strided_slice %9 {offsets = [0, 24], sizes = [8, 8], strides = [1, 1]} : vector<8x32xf32> to vector<8x8xf32>
    %67 = vector.extract_strided_slice %10 {offsets = [0, 24], sizes = [8, 8], strides = [1, 1]} : vector<8x32xf32> to vector<8x8xf32>
    %68 = vector.extract_strided_slice %11 {offsets = [0, 24], sizes = [8, 8], strides = [1, 1]} : vector<8x32xf32> to vector<8x8xf32>
    %cst_25 = arith.constant dense<0.000000e+00> : vector<8x8xf32>
    %69 = tpu.matmul %66, %67, %cst_25 {dimension_numbers = #tpu.dot_dimension_numbers<[1], [1], [0], [0], [0, 0, 1, 0], [], []>} : vector<8x8xf32>, vector<8x8xf32>, vector<8x8xf32> -> vector<8x8xf32>
    %cst_26 = arith.constant -1.000000e+06 : f32
    %70 = vector.broadcast %cst_26 : f32 to vector<8x8xf32>
    %71 = arith.select %14, %70, %69 : vector<8x8xi1>, vector<8x8xf32>
    %cst_27 = arith.constant dense<0xFF800000> : vector<8xf32>
    %72 = vector.multi_reduction <maximumf>, %71, %cst_27 [1] : vector<8x8xf32> to vector<8xf32>
    %73 = vector.shape_cast %72 : vector<8xf32> to vector<8x1xf32>
    %74 = vector.broadcast %73 : vector<8x1xf32> to vector<8x8xf32>
    %75 = arith.subf %71, %74 : vector<8x8xf32>
    %76 = math.exp %75 : vector<8x8xf32>
    %cst_28 = arith.constant dense<0.000000e+00> : vector<8xf32>
    %77 = vector.multi_reduction <add>, %76, %cst_28 [1] : vector<8x8xf32> to vector<8xf32>
    %78 = vector.shape_cast %77 : vector<8xf32> to vector<8x1xf32>
    %79 = tpu.reciprocal %78 : vector<8x1xf32> -> vector<8x1xf32>
    %80 = vector.broadcast %79 : vector<8x1xf32> to vector<8x8xf32>
    %81 = arith.mulf %76, %80 : vector<8x8xf32>
    %cst_29 = arith.constant dense<0.000000e+00> : vector<8x8xf32>
    %82 = tpu.matmul %81, %68, %cst_29 {dimension_numbers = #tpu.dot_dimension_numbers<[1], [0], [0], [1], [0, 0, 1, 1], [], []>} : vector<8x8xf32>, vector<8x8xf32>, vector<8x8xf32> -> vector<8x8xf32>
    %83 = tpu.concatenate %31, %48, %65, %82 in 1 : vector<8x8xf32>, vector<8x8xf32>, vector<8x8xf32>, vector<8x8xf32> -> vector<8x32xf32>
    %c0_30 = arith.constant 0 : index
    %c0_31 = arith.constant 0 : index
    %84 = vector.load %arg4[%c0_30, %c0_31] : memref<32x32xf32, #tpu.memory_space<vmem>>, vector<32x32xf32>
    %cst_32 = arith.constant dense<0.000000e+00> : vector<8x32xf32>
    %85 = tpu.matmul %83, %84, %cst_32 {dimension_numbers = #tpu.dot_dimension_numbers<[1], [0], [0], [1], [0, 0, 1, 1], [], []>} : vector<8x32xf32>, vector<32x32xf32>, vector<8x32xf32> -> vector<8x32xf32>
    %c0_33 = arith.constant 0 : index
    %c0_34 = arith.constant 0 : index
    %86 = vector.load %arg5[%c0_33, %c0_34] : memref<1x32xf32, #tpu.memory_space<vmem>>, vector<1x32xf32>
    %87 = vector.broadcast %86 : vector<1x32xf32> to vector<8x32xf32>
    %88 = arith.addf %85, %87 : vector<8x32xf32>
    %c0_35 = arith.constant 0 : index
    %c0_36 = arith.constant 0 : index
    %c0_37 = arith.constant 0 : index
    %89 = vector.load %arg7[%c0_35, %c0_36, %c0_37] : memref<1x8x32xf32, #tpu.memory_space<vmem>>, vector<1x8x32xf32>
    %90 = vector.shape_cast %89 : vector<1x8x32xf32> to vector<8x32xf32>
    %91 = vector.shape_cast %88 : vector<8x32xf32> to vector<1x8x32xf32>
    tpu.vector_store %arg7[%c0_35, %c0_36, %c0_37], %91 {strides = array<i32>} : memref<1x8x32xf32, #tpu.memory_space<vmem>>, vector<1x8x32xf32>,
    return
  }
  func.func @transform_0(%arg0: i32) -> (i32, i32, i32) {
    %c0_i32 = arith.constant 0 : i32
    %c0_i32_0 = arith.constant 0 : i32
    %c0_i32_1 = arith.constant 0 : i32
    return %arg0, %c0_i32, %c0_i32_0 : i32, i32, i32
  }
  func.func @transform_1(%arg0: i32) -> (i32, i32) {
    %c0_i32 = arith.constant 0 : i32
    %c0_i32_0 = arith.constant 0 : i32
    %c0_i32_1 = arith.constant 0 : i32
    return %c0_i32, %c0_i32_0 : i32, i32
  }
  func.func @transform_2(%arg0: i32) -> (i32, i32) {
    %c0_i32 = arith.constant 0 : i32
    %c0_i32_0 = arith.constant 0 : i32
    %c0_i32_1 = arith.constant 0 : i32
    return %c0_i32, %c0_i32_0 : i32, i32
  }
  func.func @transform_3(%arg0: i32) -> (i32, i32) {
    %c0_i32 = arith.constant 0 : i32
    %c0_i32_0 = arith.constant 0 : i32
    %c0_i32_1 = arith.constant 0 : i32
    return %c0_i32, %c0_i32_0 : i32, i32
  }
  func.func @transform_4(%arg0: i32) -> (i32, i32) {
    %c0_i32 = arith.constant 0 : i32
    %c0_i32_0 = arith.constant 0 : i32
    %c0_i32_1 = arith.constant 0 : i32
    return %c0_i32, %c0_i32_0 : i32, i32
  }
  func.func @transform_5(%arg0: i32) -> (i32, i32) {
    %c0_i32 = arith.constant 0 : i32
    %c0_i32_0 = arith.constant 0 : i32
    %c0_i32_1 = arith.constant 0 : i32
    return %c0_i32, %c0_i32_0 : i32, i32
  }
  func.func @transform_6(%arg0: i32) -> (i32, i32, i32) {
    %c0_i32 = arith.constant 0 : i32
    %c0_i32_0 = arith.constant 0 : i32
    %c0_i32_1 = arith.constant 0 : i32
    return %arg0, %c0_i32, %c0_i32_0 : i32, i32, i32
  }
}

</mosaic_0001>

<bundles_post_ra>
// kernel: multi_head_attention.1
= control target key start
LH: loop header
LB: loop body
LE: loop exit
PB: predicated region body
PF: predicated region fallthrough
CT: control target
= control target key end

     0   :  { %s822_s21 = smov 0   ;;  %s933_s0 = inlined_call_operand.vmem [shape: f32[2,8,32], index: 0, kind: input, shape index: {}]   ;;  %s934_s1 = inlined_call_operand.vmem [shape: f32[32,96], index: 1, kind: input, shape index: {}]   ;;  %s935_s2 = inlined_call_operand.vmem [shape: f32[1,96], index: 2, kind: input, shape index: {}]   ;;  %s936_s3 = inlined_call_operand.vmem [shape: f32[32,32], index: 3, kind: input, shape index: {}]   ;;  %s937_s4 = inlined_call_operand.vmem [shape: f32[1,32], index: 4, kind: input, shape index: {}]   ;;  %s938_s5 = inlined_call_operand.vmem [shape: f32[8,8], index: 5, kind: input, shape index: {}]   ;;  %s939_s6 = inlined_call_operand.vmem [shape: f32[2,8,32], index: 6, kind: output, shape index: {}]  }
   0x1 LB: > { %s702_s22 = sadd.s32 4294967295, %s771_s21   ;;  %p706_p0 = scmp.ge.s32.totalorder %s771_s21, 1  ;;  %s771_s21 = sphi %s822_s21, %s16_s21  }
   0x2   : > { %p211_p1 = scmp.lt.s32.totalorder %s771_s21, 3 }
   0x4   : > { %p212_p2 = pnand %p706_p0, %p211_p1 }
   0x5   : > { %p239_p3 = scmp.lt.s32.totalorder (!%p212_p2), %s702_s22, 1  ;;  %s773_s13 = smov (!%p212_p2), 72  }
   0x6   : > { %215 = sbr.rel (%p212_p2) target bundleno = 1062 (0x426), region = 44  ;;  %s774_s14 = smov (!%p212_p2), 96  }
   0x7   : > { %s775_s15 = smov (!%p212_p2), 120   ;;  %s776_s16 = smov (!%p212_p2), 88  }
   0x8   : > { %s777_s17 = smov (!%p212_p2), 112   ;;  %s778_s18 = smov (!%p212_p2), 80  }
   0x9   : > { %s779_s19 = smov (!%p212_p2), 104   ;;  %s780_s24 = smov (!%p212_p2), 56  }
   0xa   : > { %s781_s25 = smov (!%p212_p2), 40   ;;  %s782_s26 = smov (!%p212_p2), 64  }
   0xb   : > { %v251_v0 = vld [vmem:[%s934_s1 + $0x18] sm:$0xff]  ;;  %v250_v1 = vld [vmem:[%s934_s1 + $0x10] sm:$0xff]  ;;  %v249_v2 = vld [vmem:[%s934_s1 + $0x8] sm:$0xff]  ;;  %s941_s22 = smov (!%p239_p3, %s702_s22), 1  ;;  %vm256_vm0 = vcmask 261120   ;;  %vm286_vm1 = vcmask 64512  }
   0xc   : > { %272 = vmatpush.msra.mxu0 %v251_v0  ;;  %v248_v3 = vld [vmem:[%s934_s1] sm:$0xff]  ;;  %s707_s7 = sshll.u32 %s941_s22, 3  ;;  %s783_s27 = smov 48  }
   0xd   : > { %s242_s10 = scalar_lea.vmem %s933_s0, %s707_s7  ;;  %v747_v5 = vld [vmem:[%s935_s2] ss:$0 sm:$0xff]  ;;  %s784_s28 = smov 8  }
   0xe   : > { %273 = vmatpush.msra.mxu0 %v250_v1  ;;  %v247_v4 = vld [vmem:[%s242_s10] sm:$0xff]  ;;  %s785_s29 = smov 24   ;;  %s786_s30 = smov 16  }
   0xf   : > { %v281_v16 = vld [vmem:[%s938_s5] sm:$0xff]  ;;  %s246_s20 = scalar_lea.vmem %s939_s6, %s707_s7 }
  0x10   : > { %274 = vmatpush.msra.mxu0 %v249_v2  ;;  %vm282_vm2 = vcmp.gt.f32.partialorder %v281_v16, 0.0 }
  0x12   : > { %275 = vmatpush.msra.mxu0 %v248_v3 }
  0x13   : > { %709 = vmatmul.msk.f32.vlgmr.msra.gmra.mxu0 %vm256_vm0, %v247_v4 }
  0x90   : > { %v277_v6 = vpop.f32.mrf.mxu0 }
  0x91   : > { %v854_v7 = vadd.f32 %v747_v5, %v277_v6 }
  0x93   : > { %523 = vrot.lane.b32.xlu2 %v854_v7, %s773_s13  ;;  %284 = vrot.lane.b32.xlu0 %v854_v7, %s774_s14  ;;  %v280_v8 = vmul.f32 0.35355338, %v854_v7 }
  0x95   : > { %363 = vrot.lane.b32.xlu1 %v280_v8, %s775_s15 }
  0x9b   : > { %365 = vrot.lane.b32.xlu0 %v854_v7, %s776_s16  ;;  %442 = vrot.lane.b32.xlu2 %v280_v8, %s777_s17 }
  0x9d   : > { %444 = vrot.lane.b32.xlu1 %v854_v7, %s778_s18 }
  0xa3   : > { %521 = vrot.lane.b32.xlu0 %v280_v8, %s779_s19 }
  0xed   : > { %v524_v9 = vpop.permute.xlu2 %523 }
  0xee   : > { %719 = vmatpush.xpose.msk.msrb.mxu0 %vm286_vm1, %v524_v9 }
  0xf5   : > { %v443_v14 = vpop.permute.xlu2 %442 }
 0x105   : > { %v285_v10 = vpop.permute.xlu0 %284 }
 0x106   : > { %710 = vmatpush.xpose.msk.msra.mxu1 %vm286_vm1, %v285_v10 }
 0x107   : > { %v364_v11 = vpop.permute.xlu1 %363 }
 0x109   : > { %711 = vmatmul.msk.f32.vlgmr.msra.gmra.mxu1 %vm286_vm1, %v280_v8 }
 0x10d   : > { %v366_v12 = vpop.permute.xlu0 %365 }
 0x10e   : > { %713 = vmatpush.xpose.msk.msra.mxu3 %vm286_vm1, %v366_v12 }
 0x10f   : > { %v445_v13 = vpop.permute.xlu1 %444 }
 0x110   : > { %716 = vmatpush.xpose.msk.msrb.mxu1 %vm286_vm1, %v445_v13 }
 0x111   : > { %714 = vmatmul.msk.f32.vlgmr.msra.gmra.mxu3 %vm286_vm1, %v364_v11 }
 0x113   : > { %717 = vmatmul.msk.f32.vlgmr.msrb.gmra.mxu1 %vm286_vm1, %v443_v14 }
 0x115   : > { %v522_v15 = vpop.permute.xlu0 %521 }
 0x116   : > { %720 = vmatmul.msk.f32.vlgmr.msrb.gmra.mxu0 %vm286_vm1, %v522_v15 }
 0x186   : > { %v309_v17 = vpop.f32.mrf.mxu1 }
 0x187   : > { %v312_v18 = vsel %vm282_vm2, -1000000.0, %v309_v17 }
 0x188   : > { %v313_v19 = vsel %vm286_vm1, %v312_v18, -inf }
 0x189   : > { %314 = vmax.xlane.f32.xlu1 %v313_v19 }
 0x190   : > { %v467_v20 = vpop.f32.mrf.mxu1 }
 0x191   : > { %v470_v21 = vsel %vm282_vm2, -1000000.0, %v467_v20 }
 0x192   : > { %v471_v22 = vsel %vm286_vm1, %v470_v21, -inf }
 0x193   : > { %472 = vmax.xlane.f32.xlu0 %v471_v22  ;;  %v546_v26 = vpop.f32.mrf.mxu0 }
 0x194   : > { %v388_v23 = vpop.f32.mrf.mxu3  ;;  %v549_v27 = vsel %vm282_vm2, -1000000.0, %v546_v26 }
 0x195   : > { %v391_v24 = vsel %vm282_vm2, -1000000.0, %v388_v23  ;;  %v550_v28 = vsel %vm286_vm1, %v549_v27, -inf }
 0x196   : > { %v392_v25 = vsel %vm286_vm1, %v391_v24, -inf }
 0x197   : > { %393 = vmax.xlane.f32.xlu2 %v392_v25 }
 0x19f   : > { %551 = vmax.xlane.f32.xlu2 %v550_v28 }
 0x1a7   : > { %416 = vrot.lane.b32.xlu0 %v854_v7, %s780_s24 }
 0x1fc   : > { %v315_v29 = vpop.xlane.xlu1 %314 }
 0x1fd   : > { %v316_v30 = vsub.f32 %v312_v18, %v315_v29 }
 0x1ff   : > { %v317_v31 = vmul.f32 1.442695, %v316_v30 }
 0x201   : > { %749 = vpow2.f32 %v317_v31 }
 0x206   : > { %v473_v32 = vpop.xlane.xlu0 %472 }
 0x207   : > { %v750_v33 = vpop.eup %749  ;;  %v474_v34 = vsub.f32 %v470_v21, %v473_v32 }
 0x208   : > { %v319_v35 = vsel %vm286_vm1, %v750_v33, 0.0 }
 0x209   : > { %v475_v36 = vmul.f32 1.442695, %v474_v34  ;;  %320 = vadd.xlane.f32.xlu1 %v319_v35 }
 0x20a   : > { %v394_v37 = vpop.xlane.xlu2 %393 }
 0x20b   : > { %751 = vpow2.f32 %v475_v36  ;;  %v395_v38 = vsub.f32 %v391_v24, %v394_v37 }
 0x20d   : > { %v396_v39 = vmul.f32 1.442695, %v395_v38 }
 0x20f   : > { %753 = vpow2.f32 %v396_v39 }
 0x211   : > { %v878_v40 = vpop.eup %751 }
 0x212   : > { %v552_v41 = vpop.xlane.xlu2 %551  ;;  %v477_v42 = vsel %vm286_vm1, %v878_v40, 0.0 }
 0x213   : > { %v553_v43 = vsub.f32 %v549_v27, %v552_v41  ;;  %478 = vadd.xlane.f32.xlu0 %v477_v42  ;;  %v620_v42 = vld [vmem:[%s936_s3 + $0x18] sm:$0xff] }
 0x214   : > { %640 = vmatpush.msra.mxu1 %v620_v42 }
 0x215   : > { %v882_v44 = vpop.eup %753  ;;  %v554_v45 = vmul.f32 1.442695, %v553_v43  ;;  %v618_v43 = vld [vmem:[%s936_s3 + $0x8] sm:$0xff] }
 0x216   : > { %v398_v46 = vsel %vm286_vm1, %v882_v44, 0.0 }
 0x217   : > { %755 = vpow2.f32 %v554_v45  ;;  %399 = vadd.xlane.f32.xlu2 %v398_v46 }
 0x219   : > { %v417_v50 = vpop.permute.xlu0 %416 }
 0x21d   : > { %v886_v47 = vpop.eup %755 }
 0x21e   : > { %v556_v48 = vsel %vm286_vm1, %v886_v47, 0.0 }
 0x21f   : > { %557 = vadd.xlane.f32.xlu1 %v556_v48 }
 0x227   : > { %574 = vrot.lane.b32.xlu0 %v854_v7, %s781_s25 }
 0x22f   : > { %337 = vrot.lane.b32.xlu2 %v854_v7, %s782_s26 }
 0x238   : > { %495 = vrot.lane.b32.xlu1 %v854_v7, %s783_s27 }
 0x27c   : > { %v321_v49 = vpop.xlane.xlu1 %320 }
 0x27d   : > { %757 = vrcp.f32 %v321_v49  ;;  %v333_v56 = vand.u32 2147483648, %v321_v49  ;;  %vm327_vm4 = vweird.f32 %v321_v49  ;;  %v331_v59 = vand.u32 2147483647, %v321_v49 }
 0x27f   : > { %v334_v61 = vor.u32 1.1754944e-38, %v333_v56  ;;  %vm332_vm6 = vcmp.eq.f32.partialorder %v331_v59, 8.507059e+37 }
 0x283   : > { %v758_v51 = vpop.eup %757 }
 0x284   : > { %v323_v52 = vmul.f32 %v758_v51, %v321_v49  ;;  %vm328_vm3 = vweird.f32 %v758_v51 }
 0x285   : > { %vm329_vm5 = vmor %vm327_vm4, %vm328_vm3 }
 0x286   : > { %v324_v53 = vsub.f32 1.0, %v323_v52  ;;  %v893_v54 = vpop.xlane.xlu0 %478 }
 0x287   : > { %759 = vrcp.f32 %v893_v54  ;;  %v491_v26 = vand.u32 2147483648, %v893_v54  ;;  %vm485_vm15 = vweird.f32 %v893_v54  ;;  %v489_v28 = vand.u32 2147483647, %v893_v54 }
 0x288   : > { %v325_v55 = vmul.f32 %v758_v51, %v324_v53 }
 0x289   : > { %vm490_vm4 = vcmp.eq.f32.partialorder %v489_v28, 8.507059e+37 }
 0x28a   : > { %v400_v57 = vpop.xlane.xlu2 %399  ;;  %v326_v58 = vadd.f32 %v758_v51, %v325_v55 }
 0x28b   : > { %761 = vrcp.f32 %v400_v57  ;;  %v412_v7 = vand.u32 2147483648, %v400_v57  ;;  %v410_v9 = vand.u32 2147483647, %v400_v57  ;;  %vm406_vm8 = vweird.f32 %v400_v57 }
 0x28c   : > { %v330_v60 = vsel %vm329_vm5, %v758_v51, %v326_v58  ;;  %vm613_vm5 = vcmask 130048   ;;  %v748_v51 = vld [vmem:[%s937_s4] ss:$0 sm:$0xff] }
 0x28d   : > { %v335_v62 = vsel %vm332_vm6, %v334_v61, %v330_v60  ;;  %v760_v63 = vpop.eup %759  ;;  %v413_v13 = vor.u32 1.1754944e-38, %v412_v7  ;;  %vm411_vm10 = vcmp.eq.f32.partialorder %v410_v9, 8.507059e+37  ;;  %vm615_vm6 = vcmask 195584  }
 0x28e   : > { %v336_v4 = vmul.f32 %v750_v33, %v335_v62  ;;  %v481_v5 = vmul.f32 %v760_v63, %v893_v54  ;;  %vm486_vm12 = vweird.f32 %v760_v63  ;;  %v492_v33 = vor.u32 1.1754944e-38, %v491_v26 }
 0x28f   : > { %vm487_vm3 = vmor %vm485_vm15, %vm486_vm12 }
 0x290   : > { %v482_v10 = vsub.f32 1.0, %v481_v5 }
 0x291   : > { %v762_v0 = vpop.eup %761 }
 0x292   : > { %v402_v1 = vmul.f32 %v762_v0, %v400_v57  ;;  %v338_v2 = vpop.permute.xlu2 %337  ;;  %v558_v3 = vpop.xlane.xlu1 %557  ;;  %vm407_vm7 = vweird.f32 %v762_v0  ;;  %v483_v18 = vmul.f32 %v760_v63, %v482_v10 }
 0x293   : > { %763 = vrcp.f32 %v558_v3  ;;  %358 = vmatpush.msra.mxu2 %v338_v2  ;;  %vm408_vm9 = vmor %vm406_vm8, %vm407_vm7  ;;  %v570_v21 = vand.u32 2147483648, %v558_v3  ;;  %v568_v23 = vand.u32 2147483647, %v558_v3  ;;  %vm564_vm13 = vweird.f32 %v558_v3 }
 0x294   : > { %v403_v6 = vsub.f32 1.0, %v402_v1  ;;  %712 = vmatmul.msk.f32.vlgmr.msra.gmra.mxu2 %vm286_vm1, %v336_v4  ;;  %v484_v24 = vadd.f32 %v760_v63, %v483_v18 }
 0x295   : > { %437 = vmatpush.msrb.mxu2 %v417_v50  ;;  %v571_v27 = vor.u32 1.1754944e-38, %v570_v21  ;;  %vm569_vm2 = vcmp.eq.f32.partialorder %v568_v23, 8.507059e+37 }
 0x296   : > { %v404_v8 = vmul.f32 %v762_v0, %v403_v6  ;;  %v488_v32 = vsel %vm487_vm3, %v760_v63, %v484_v24 }
 0x297   : > { %v493_v34 = vsel %vm490_vm4, %v492_v33, %v488_v32 }
 0x298   : > { %v405_v11 = vadd.f32 %v762_v0, %v404_v8  ;;  %v494_v36 = vmul.f32 %v878_v40, %v493_v34  ;;  %v619_v40 = vld [vmem:[%s936_s3 + $0x10] sm:$0xff] }
 0x299   : > { %v764_v12 = vpop.eup %763  ;;  %v575_v14 = vpop.permute.xlu0 %574  ;;  %641 = vmatpush.msra.mxu1 %v619_v40 }
 0x29a   : > { %v560_v15 = vmul.f32 %v764_v12, %v558_v3  ;;  %595 = vmatpush.msra.mxu2 %v575_v14  ;;  %v409_v16 = vsel %vm408_vm9, %v762_v0, %v405_v11  ;;  %vm565_vm11 = vweird.f32 %v764_v12 }
 0x29b   : > { %v414_v17 = vsel %vm411_vm10, %v413_v13, %v409_v16  ;;  %vm566_vm14 = vmor %vm564_vm13, %vm565_vm11  ;;  %642 = vmatpush.msra.mxu1 %v618_v43 }
 0x29c   : > { %v561_v19 = vsub.f32 1.0, %v560_v15  ;;  %v415_v20 = vmul.f32 %v882_v44, %v414_v17  ;;  %v617_v44 = vld [vmem:[%s936_s3] sm:$0xff] }
 0x29d   : > { %643 = vmatpush.msra.mxu1 %v617_v44 }
 0x29e   : > { %v562_v22 = vmul.f32 %v764_v12, %v561_v19  ;;  %715 = vmatmul.msk.f32.vlgmr.msrb.gmra.mxu2 %vm286_vm1, %v415_v20 }
 0x2a0   : > { %v563_v25 = vadd.f32 %v764_v12, %v562_v22 }
 0x2a2   : > { %v567_v29 = vsel %vm566_vm14, %v764_v12, %v563_v25 }
 0x2a3   : > { %v572_v30 = vsel %vm569_vm2, %v571_v27, %v567_v29 }
 0x2a4   : > { %v573_v31 = vmul.f32 %v886_v47, %v572_v30 }
 0x2a6   : > { %721 = vmatmul.msk.f32.vlgmr.msra.gmra.mxu2 %vm286_vm1, %v573_v31 }
 0x2aa   : > { %v496_v35 = vpop.permute.xlu1 %495 }
 0x2ab   : > { %516 = vmatpush.msrb.mxu3 %v496_v35 }
 0x2ac   : > { %718 = vmatmul.msk.f32.vlgmr.msrb.gmra.mxu3 %vm286_vm1, %v494_v36 }
 0x317   : > { %v360_v37 = vpop.f32.mrf.mxu2 }
 0x321   : > { %v439_v38 = vpop.f32.mrf.mxu2 }
 0x322   : > { %601 = vrot.lane.b32.xlu2 %v439_v38, %s784_s28 }
 0x329   : > { %v597_v39 = vpop.f32.mrf.mxu2 }
 0x32a   : > { %609 = vrot.lane.b32.xlu0 %v597_v39, %s785_s29 }
 0x32f   : > { %v518_v41 = vpop.f32.mrf.mxu3 }
 0x330   : > { %605 = vrot.lane.b32.xlu1 %v518_v41, %s786_s30 }
 0x37c   : > { %v602_v45 = vpop.permute.xlu2 %601 }
 0x37d   : > { %v612_v46 = vsel %vm286_vm1, %v360_v37, %v602_v45 }
 0x39c   : > { %v610_v48 = vpop.permute.xlu0 %609 }
 0x3a2   : > { %v606_v47 = vpop.permute.xlu1 %605 }
 0x3a3   : > { %v614_v49 = vsel %vm613_vm5, %v612_v46, %v606_v47 }
 0x3a4   : > { %v616_v50 = vsel %vm615_vm6, %v614_v49, %v610_v48 }
 0x3a5   : > { %722 = vmatmul.msk.f32.vlgmr.msra.gmra.mxu1 %vm256_vm0, %v616_v50 }
 0x422   : > { %v645_v52 = vpop.f32.mrf.mxu1 }
 0x423   : > { %v646_v53 = vadd.f32 %v748_v51, %v645_v52 }
 0x425   : > { %648 = vst.msk [vmem:[%s246_s20] sm:$0xff] %vm256_vm0, %v646_v53 }
 0x426 PF: > { %s16_s21 = sadd.s32 1, %s771_s21  }
 0x427   : > { %p13_p4 = scmp.ge.s32.totalorder %s16_s21, 4  }
 0x429   :  { %15 = sbr.rel (!%p13_p4) target bundleno = 1 (0x1), region = 74 }

</bundles_post_ra>
